<compile_context>
chip_gen: v7x
topology: tpu7x:2x2x1
jax: 0.10.0
libtpu: 0.0.40
codegen_flags: <defaults>
</compile_context>

<pallas_src>
import functools
import math

import jax
import jax.numpy as jnp
from jax.experimental import pallas as pl
from jax.experimental.pallas import tpu as pltpu


def _round_up(n: int, m: int) -> int:
    return ((n + m - 1) // m) * m


def _cdiv(a: int, b: int) -> int:
    return -(-a // b)


def _pe_kernel(x_ref, tbl_ref, out_ref, *, k: int):
    """One batch tile.

    x_ref:   (TB, k)    f32 timesteps.  k == 1: one timestep per output row.
                        k > 1 (lane-packed small-dim path): row r carries the
                        128//dim timesteps whose embeddings share output row r
                        (zero-padded up to k columns).
    tbl_ref: (k+1, W)   f32 resident table.  Rows 0..k-1: frequency/selection
                        matrix F with F[j, j*dim + d] = freq[d] (zeros elsewhere);
                        row k: phase ([0]*half + [pi/2]*half tiled), so that
                        sin(z + pi/2) == cos(z).
    out_ref: (TB, W)    embeddings; W is lane-dense (128 for the packed path).
    """
    phase = tbl_ref[k:k + 1, :]                                   # (1, W) static view
    if k == 1:
        z = x_ref[...] * tbl_ref[0:1, :]                          # VPU broadcast multiply
    else:
        # Lane expansion + frequency scaling fused into one small MXU matmul
        # (MXU slot is otherwise idle; avoids cross-lane XLU work / extra VPU passes).
        z = jnp.dot(x_ref[...], tbl_ref[0:k, :],
                    preferred_element_type=jnp.float32)           # (TB, W)
    # One fused transcendental pass, one unmasked lane-dense store per tile.
    out_ref[...] = jnp.sin(z + phase).astype(out_ref.dtype)


def _choose_tb(rows: int, w: int, itemsize: int, max_tile_bytes: int) -> int:
    """Batch-tile rows: multiple of 8, <= ~max_tile_bytes of output per buffer,
    and <= ~rows/2 so v7x's two TensorCores both get work ("parallel" axis)."""
    if rows <= 8:
        return rows
    cap = max(8, ((max_tile_bytes // (w * itemsize)) // 8) * 8)
    half = _round_up(_cdiv(rows, 2), 8)
    return max(8, min(cap, half))


def sinusoidal_positional_encoding(
    x: jax.Array,
    dim: int,
    *,
    dtype=jnp.float32,
    max_tile_bytes: int = 8 << 20,
) -> jax.Array:
    """Pallas equivalent of SinusoidalPositionalEncoding.forward.

    Args:
      x:    (B,) float timesteps.
      dim:  embedding dimension (must be even).
      dtype: output dtype (float32 default; bfloat16 halves HBM writeback).
    Returns:
      (B, dim) embeddings: [sin(x*f_0..f_{h-1}), cos(x*f_0..f_{h-1})].
    """
    assert dim % 2 == 0, f"# dimensions must be even but got {dim}"
    half = dim // 2
    B = int(x.shape[0])

    # Frequency / phase tables computed once in the wrapper (no per-element
    # in-kernel iota/exp).  half == 1 would divide by zero (torch reference
    # yields NaN); use the natural limit freq = exp(0) = 1.0 instead.
    scale = (-math.log(10000.0) / (half - 1)) if half > 1 else 0.0
    freq_half = jnp.exp(jnp.arange(half, dtype=jnp.float32) * scale)            # (h,)
    freq_full = jnp.concatenate([freq_half, freq_half])                         # (dim,)
    phase_full = jnp.concatenate(
        [jnp.zeros((half,), jnp.float32),
         jnp.full((half,), 0.5 * math.pi, jnp.float32)])                        # (dim,)

    x_f32 = x.astype(jnp.float32)
    pack = 128 // dim if (dim < 128 and 128 % dim == 0) else 1

    if pack == 1:
        # dim >= 128 (already lane-dense) or small-dim fallback when dim doesn't
        # divide 128.  One timestep per output row; no padding, no trailing slice.
        w, k, rows, b_pad = dim, 1, B, B
        x_in = x_f32.reshape(B, 1)
        tbl = jnp.stack([freq_full, phase_full])                                 # (2, dim)
    else:
        # Lane-packed path: 128//dim embeddings per 128-lane output row so every
        # store is an unmasked full-width vst.  Pad rows to a multiple of 8 and
        # the contraction dim to >= 8 (tiny, keeps the MXU shape fully aligned).
        w = 128
        k = max(8, _round_up(pack, 8))
        rows = _round_up(_cdiv(B, pack), 8)
        b_pad = rows * pack
        x_in = jnp.pad(x_f32, (0, b_pad - B)).reshape(rows, pack)
        x_in = jnp.pad(x_in, ((0, 0), (0, k - pack)))                            # (rows, k)
        sel = jnp.kron(jnp.eye(pack, dtype=jnp.float32), freq_full[None, :])     # (pack, 128)
        sel = jnp.pad(sel, ((0, k - pack), (0, 0)))                              # (k, 128)
        tbl = jnp.concatenate([sel, jnp.tile(phase_full, pack)[None, :]], 0)     # (k+1, 128)

    itemsize = jnp.dtype(dtype).itemsize
    tb = _choose_tb(rows, w, itemsize, max_tile_bytes)
    grid = (_cdiv(rows, tb),)

    out_elems = rows * w
    cost = pl.CostEstimate(
        flops=2 * out_elems * max(k, 1),
        transcendentals=out_elems,
        bytes_accessed=out_elems * itemsize + rows * k * 4 + (k + 1) * w * 4,
    )

    # TODO(synk): pipeline_mode=pl.Buffered(1) on the resident table spec would drop
    # its pointless second buffer; omitted here to keep the lowering path vanilla.
    out = pl.pallas_call(
        functools.partial(_pe_kernel, k=k),
        out_shape=jax.ShapeDtypeStruct((rows, w), dtype),
        grid=grid,
        in_specs=[
            pl.BlockSpec((tb, k), lambda i: (i, 0)),        # timesteps: tiled over batch rows
            pl.BlockSpec((k + 1, w), lambda i: (0, 0)),     # merged freq/phase table: resident
        ],
        out_specs=pl.BlockSpec((tb, w), lambda i: (i, 0)),
        compiler_params=pltpu.CompilerParams(
            dimension_semantics=("parallel",),              # batch tiles shard across v7x's 2 TCs
            vmem_limit_bytes=32 << 20,                      # 2 x 8 MiB out buffers + inputs, all gens
        ),
        cost_estimate=cost,
    )(x_in, tbl)

    if pack == 1:
        return out
    out = out.reshape(b_pad, dim)
    return out[:B] if b_pad != B else out                   # <= 8*pack-1 padded rows, negligible


def _reference(x: jax.Array, dim: int) -> jax.Array:
    """Pure-XLA reference (faithful to the torch module)."""
    half_dim = dim // 2
    exponent = jnp.arange(half_dim, dtype=jnp.float32) * (-math.log(10000.0) / (half_dim - 1))
    emb = jnp.exp(exponent)
    emb = x.astype(jnp.float32)[:, None] * emb[None, :]
    return jnp.concatenate([jnp.sin(emb), jnp.cos(emb)], axis=-1)


if __name__ == "__main__":
    key = jax.random.PRNGKey(0)
    k1, k2, k3 = jax.random.split(key, 3)

    # Batch of 32 diffusion timesteps -> (32, 128): lane-dense dim >= 128 path,
    # 2 grid steps (batch split across TensorCores on v7x).
    B, dim = 32, 128
    x = jax.random.uniform(k1, (B,), dtype=jnp.float32, minval=0.0, maxval=1000.0)
    out = jax.block_until_ready(sinusoidal_positional_encoding(x, dim))
    ref = _reference(x, dim)
    assert out.shape == (B, dim) and out.dtype == jnp.float32
    # cos is computed as sin(z + pi/2); for timesteps up to ~1e3 f32 range
    # reduction makes it differ from the reference by a few 1e-5.
    assert jnp.allclose(out, ref, atol=2e-4, rtol=1e-5), "mismatch (B=32, dim=128)"

    # Small dim (< 128): lane-packed path (4 embeddings per 128-lane output row),
    # B not a multiple of the packing factor nor of 8 (exercises pad + slice path
    # and the MXU expansion matmul).
    B2, dim2 = 10, 32
    x2 = jax.random.uniform(k2, (B2,), dtype=jnp.float32, minval=0.0, maxval=1000.0)
    out2 = jax.block_until_ready(sinusoidal_positional_encoding(x2, dim2))
    ref2 = _reference(x2, dim2)
    assert out2.shape == (B2, dim2)
    assert jnp.allclose(out2, ref2, atol=2e-4, rtol=1e-5), "mismatch (B=10, dim=32)"

    # Non-multiple-of-8 batch with dim >= 128: un-padded partial last grid block
    # handled purely by Pallas boundary masking (no wrapper pad / out[:B] copy).
    B3, dim3 = 13, 128
    x3 = jax.random.uniform(k3, (B3,), dtype=jnp.float32, minval=0.0, maxval=1000.0)
    out3 = jax.block_until_ready(sinusoidal_positional_encoding(x3, dim3))
    ref3 = _reference(x3, dim3)
    assert out3.shape == (B3, dim3)
    assert jnp.allclose(out3, ref3, atol=2e-4, rtol=1e-5), "mismatch (B=13, dim=128)"

    print("KERNEL_OK")
</pallas_src>

<mosaic_0001>
module attributes {stable_mosaic.version = 11 : i64} {
  func.func @_pe_kernel(%arg0: i32, %arg1: memref<16x1xf32, #tpu.memory_space<vmem>>, %arg2: memref<2x128xf32, #tpu.memory_space<vmem>>, %arg3: memref<16x128xf32, #tpu.memory_space<vmem>>) attributes {dimension_semantics = [#tpu.dimension_semantics<parallel>], iteration_bounds = array<i64: 2>, scalar_prefetch = 0 : i64, scratch_operands = 0 : i64, tpu.core_type = #tpu.core_type<tc>, window_params = [{transform_indices = @transform_0, window_bounds = array<i64: 16, 1>}, {pipeline_mode = #tpu.pipeline_mode<synchronous>, transform_indices = @transform_1, window_bounds = array<i64: 2, 128>}, {transform_indices = @transform_2, window_bounds = array<i64: 16, 128>}]} {
    %c1 = arith.constant 1 : index
    %c0 = arith.constant 0 : index
    %0 = vector.load %arg2[%c1, %c0] : memref<2x128xf32, #tpu.memory_space<vmem>>, vector<1x128xf32>
    %c0_0 = arith.constant 0 : index
    %c0_1 = arith.constant 0 : index
    %1 = vector.load %arg1[%c0_0, %c0_1] : memref<16x1xf32, #tpu.memory_space<vmem>>, vector<16x1xf32>
    %c0_2 = arith.constant 0 : index
    %c0_3 = arith.constant 0 : index
    %2 = vector.load %arg2[%c0_2, %c0_3] : memref<2x128xf32, #tpu.memory_space<vmem>>, vector<1x128xf32>
    %3 = vector.broadcast %1 : vector<16x1xf32> to vector<16x128xf32>
    %4 = vector.broadcast %2 : vector<1x128xf32> to vector<16x128xf32>
    %5 = arith.mulf %3, %4 : vector<16x128xf32>
    %6 = vector.broadcast %0 : vector<1x128xf32> to vector<16x128xf32>
    %7 = arith.addf %5, %6 : vector<16x128xf32>
    %8 = math.sin %7 : vector<16x128xf32>
    %c0_4 = arith.constant 0 : index
    %c0_5 = arith.constant 0 : index
    %9 = vector.load %arg3[%c0_4, %c0_5] : memref<16x128xf32, #tpu.memory_space<vmem>>, vector<16x128xf32>
    tpu.vector_store %arg3[%c0_4, %c0_5], %8 {strides = array<i32>} : memref<16x128xf32, #tpu.memory_space<vmem>>, vector<16x128xf32>,
    return
  }
  func.func @transform_0(%arg0: i32) -> (i32, i32) {
    %c0_i32 = arith.constant 0 : i32
    %c0_i32_0 = arith.constant 0 : i32
    return %arg0, %c0_i32 : i32, i32
  }
  func.func @transform_1(%arg0: i32) -> (i32, i32) {
    %c0_i32 = arith.constant 0 : i32
    %c0_i32_0 = arith.constant 0 : i32
    %c0_i32_1 = arith.constant 0 : i32
    return %c0_i32, %c0_i32_0 : i32, i32
  }
  func.func @transform_2(%arg0: i32) -> (i32, i32) {
    %c0_i32 = arith.constant 0 : i32
    %c0_i32_0 = arith.constant 0 : i32
    return %arg0, %c0_i32 : i32, i32
  }
}

</mosaic_0001>

<bundles_post_ra>
// kernel: tpu_custom_call.1
= control target key start
LH: loop header
LB: loop body
LE: loop exit
PB: predicated region body
PF: predicated region fallthrough
CT: control target
= control target key end

     0   :  { %7 = vsyncpa [#allocation3], 0  ;;  %s814_s0 = inlined_call_operand.vmem [shape: f32[32,1], index: 0, kind: input, shape index: {}]   ;;  %s815_s1 = inlined_call_operand.vmem [shape: f32[2,128], index: 1, kind: input, shape index: {}]   ;;  %s816_s2 = inlined_call_operand.hbm [shape: f32[32,128], index: 2, kind: output, shape index: {}]  }
   0x1   :  { %9 = vsyncpa [#allocation3 + $0x1], 0  ;;  %s634_s9 = smov 0   ;;  %s636_s10 = smov 0  }
   0x2   :  { %s638_s11 = smov 0   ;;  %s640_s12 = smov 0  }
   0x3 LB: > { %s655_s13 = sadd.s32 4294967295, %s607_s12   ;;  %s457_s14 = sadd.s32 4294967294, %s607_s12   ;;  %s607_s12 = sphi %s640_s12, %s824_s12   ;;  %s603_s11 = sphi %s638_s11, %s823_s11   ;;  %s599_s10 = sphi %s636_s10, %s822_s10   ;;  %s595_s9 = sphi %s634_s9, %s821_s9  }
   0x4   : > { %s659_s15 = sadd.s32 1, %s607_s12   ;;  %s69_s16 = sadd.s32 1, %s603_s11 }
   0x5   : > { %s66_s17 = ssub.s32 %s607_s12, %s659_s15  ;;  %p79_p0 = scmp.ne.s32.totalorder %s603_s11, %s599_s10 }
   0x6   : > { %p67_p1 = scmp.eq.s32.totalorder %s66_s17, 0  ;;  %p80_p2 = scmp.eq.s32.totalorder %s655_s13, 1 }
   0x7   : > { %p85_p3 = scmp.ne.s32.totalorder %s599_s10, %s595_s9  ;;  %p86_p4 = scmp.eq.s32.totalorder %s457_s14, 1 }
   0x8   : > { %s670_s18 = scalar_select %p67_p1, %s603_s11, %s69_s16  }
   0x9   : > { %p672_p5 = por %p80_p2, %p79_p0  ;;  %p676_p6 = por %p86_p4, %p85_p3 }
   0xa   : > { %p460_p7 = scmp.ge.s32.totalorder %s607_s12, 1  ;;  %p116_p8 = scmp.lt.s32.totalorder %s607_s12, 3 }
   0xc   : > { %p117_p9 = pnand %p460_p7, %p116_p8 }
   0xd   : > { %s462_s21 = sshll.u32 (!%p117_p9), %s655_s13, 1  ;;  %v609_v0 = vmov (!%p117_p9), 0   ;;  %v464_v3 = vld [vmem:[%s815_s1] ss:$0 sm:$0xff] (!%p117_p9)  ;;  %v465_v4 = vld [vmem:[%s815_s1 + $0x1] ss:$0 sm:$0xff] (!%p117_p9) }
   0xe   : > { %120 = sbr.rel (%p117_p9) target bundleno = 262 (0x106), region = 28  ;;  %536 = vset.pattern.permute.xlu0 (!%p117_p9), %v609_v0  ;;  %p139_p10 = scmp.lt.s32.totalorder (!%p117_p9), %s462_s21, 3  ;;  %v610_v27 = vmov (!%p117_p9), 683565275   ;;  %v611_v31 = vmov (!%p117_p9), 2475754826  }
   0xf   : > { %v612_v33 = vmov (!%p117_p9), 2131351028   ;;  %v613_v35 = vmov (!%p117_p9), 2102212464   ;;  %v614_v37 = vmov (!%p117_p9), 920167782  }
  0x10   : > { %v615_v44 = vmov (!%p117_p9), 1326507024   ;;  %s135_s30 = sand.u32 (!%p117_p9), 1, %s599_s10   ;;  %s479_s5 = sshll.u32 (!%p117_p9), %s655_s13, 8 }
  0x11   : > { %s461_s3 = sshll.u32 (!%p117_p9), %s135_s30, 4  ;;  %s766_s14 = scalar_lea.hbm (!%p117_p9), %s816_s2, %s479_s5 }
  0x12   : > { %s137_s4 = scalar_lea.vmem (!%p117_p9), [#allocation2], %s461_s3  ;;  %s773_s13 = scalar_lea.sflag (!%p117_p9), [#allocation3], %s135_s30 }
  0x13   : > { %s395_s6 = sshll.u32 (!%p117_p9), %s137_s4, 4  ;;  %s616_s17 = smov (!%p117_p9), [#allocation2]   ;;  %s768_s6 = int_to_ptr.vmem [resolvable:$true] %s395_s6 }
  0x14   : > { %s545_s16 = scalar_lea.vmem (!%p117_p9), %s768_s6, 256 }
  0x15   : > { %s826_s21 = smov (!%p139_p10, %s462_s21), 3  ;;  %p546_p11 = scmp.ne.s32.totalorder %s768_s6, %s545_s16 }
  0x16   : > { %s463_s22 = sshll.u32 %s826_s21, 3  ;;  %s549_s21 = sshll.u32 %s616_s17, 4  ;;  %s550_s21 = int_to_ptr.vmem [resolvable:$false] %s549_s21 }
  0x17   : > { %s142_s25 = scalar_lea.vmem %s814_s0, %s463_s22  ;;  %p547_p12 = pnand %p546_p11, %p672_p5 }
  0x18   : > { %v146_v1 = vld [vmem:[%s142_s25] sm:$0xff]  ;;  %v147_v2 = vld [vmem:[%s142_s25 + $0x8] sm:$0xff]  ;;  %s551_s22 = scalar_lea.vmem %s550_s21, 512  ;;  %p552_p0 = scmp.lt.s32.totalorder %s768_s6, %s550_s21 }
  0x19   : > { %151 = vperm.xlu0 %536, %v146_v1   ;;  %p548_p13 = pneg %p547_p12  ;;  %p553_p1 = scmp.lt.s32.totalorder %s551_s22, %s545_s16 }
  0x1b   : > { %p554_p2 = por %p553_p1, %p552_p0 }
  0x1d   : > { %156 = vperm.xlu0 %536, %v147_v2   ;;  %p555_p3 = pnand %p554_p2, %p548_p13 }
  0x98   : > { %v152_v5 = vpop.permute.xlu0 %151 }
  0x99   : > { %v163_v6 = vmul.f32 %v464_v3, %v152_v5 }
  0x9b   : > { %v692_v7 = vadd.f32 %v465_v4, %v163_v6 }
  0x9c   : > { %v157_v8 = vpop.permute.xlu0 %156 }
  0x9d   : > { %v171_v9 = vand.u32 2147483647, %v692_v7  ;;  %v174_v10 = vand.u32 2139095040, %v692_v7  ;;  %v164_v11 = vmul.f32 %v464_v3, %v157_v8  ;;  %vm173_vm14 = vcmp.lt.s32.totalorder %v692_v7, 0 }
  0x9f   : > { %v175_v12 = vshrl.u32 %v174_v10, 23  ;;  %v696_v13 = vadd.f32 %v465_v4, %v164_v11  ;;  %v178_v14 = vand.u32 8388607, %v171_v9  ;;  %vm172_vm15 = vcmp.le.f32.partialorder %v171_v9, 0.7853982 }
  0xa1   : > { %v466_v15 = vadd.s32 4294967169, %v175_v12  ;;  %v278_v16 = vand.u32 2139095040, %v696_v13  ;;  %v179_v18 = vor.u32 8388608, %v178_v14  ;;  %v275_v20 = vand.u32 2147483647, %v696_v13 }
  0xa3   : > { %v181_v17 = vadd.s32 1, %v466_v15  ;;  %v279_v19 = vshrl.u32 %v278_v16, 23  ;;  %v702_v25 = vshll.u32 %v179_v18, 8  ;;  %v282_v29 = vand.u32 8388607, %v275_v20 }
  0xa5   : > { %vm182_vm0 = vcmp.gt.s32.totalorder %v181_v17, 0  ;;  %v470_v22 = vadd.s32 4294967169, %v279_v19  ;;  %v283_v59 = vor.u32 8388608, %v282_v29 }
  0xa6   : > { %v183_v21 = vsel %vm182_vm0, %v181_v17, 0  ;;  %vm277_vm0 = vcmp.lt.s32.totalorder %v696_v13, 0 }
  0xa7   : > { %v184_v23 = vshrl.u32 %v183_v21, 5  ;;  %v185_v24 = vand.u32 31, %v183_v21  ;;  %v285_v30 = vadd.s32 1, %v470_v22  ;;  %v323_v10 = vshll.u32 %v283_v59, 8 }
  0xa9   : > { %v186_v26 = vsub.s32 32, %v185_v24  ;;  %v188_v28 = vshll.u32 %v610_v27, %v185_v24  ;;  %v191_v32 = vshll.u32 %v611_v31, %v185_v24  ;;  %v194_v34 = vshll.u32 %v612_v33, %v185_v24 }
  0xaa   : > { %v197_v36 = vshll.u32 %v613_v35, %v185_v24  ;;  %v200_v38 = vshll.u32 %v614_v37, %v185_v24  ;;  %vm203_vm1 = vcmp.lt.s32.totalorder %v184_v23, 1  ;;  %vm205_vm2 = vcmp.lt.s32.totalorder %v184_v23, 3 }
  0xab   : > { %v189_v39 = vshrl.u32 %v611_v31, %v186_v26  ;;  %v192_v40 = vshrl.u32 %v612_v33, %v186_v26  ;;  %v195_v41 = vshrl.u32 %v613_v35, %v186_v26  ;;  %v187_v42 = vshrl.u32 %v610_v27, %v186_v26 }
  0xac   : > { %v198_v43 = vshrl.u32 %v614_v37, %v186_v26  ;;  %v201_v45 = vshrl.u32 %v615_v44, %v186_v26  ;;  %vm286_vm3 = vcmp.gt.s32.totalorder %v285_v30, 0  ;;  %vm206_vm4 = vcmp.lt.s32.totalorder %v184_v23, 4 }
  0xad   : > { %v190_v46 = vor.u32 %v189_v39, %v188_v28  ;;  %v193_v47 = vor.u32 %v192_v40, %v191_v32  ;;  %v196_v48 = vor.u32 %v195_v41, %v194_v34  ;;  %v287_v51 = vsel %vm286_vm3, %v285_v30, 0 }
  0xae   : > { %v199_v49 = vor.u32 %v198_v43, %v197_v36  ;;  %v202_v50 = vor.u32 %v201_v45, %v200_v38  ;;  %vm204_vm5 = vcmp.lt.s32.totalorder %v184_v23, 2  ;;  %v289_v62 = vand.u32 31, %v287_v51 }
  0xaf   : > { %v207_v52 = vsel %vm203_vm1, %v187_v42, %v190_v46  ;;  %v208_v53 = vsel %vm206_vm4, %v196_v48, 2102212464  ;;  %v211_v54 = vsel %vm203_vm1, %v190_v46, %v193_v47  ;;  %v215_v55 = vsel %vm203_vm1, %v193_v47, %v196_v48 }
  0xb0   : > { %v209_v56 = vsel %vm205_vm2, %v193_v47, %v208_v53  ;;  %v212_v57 = vsel %vm206_vm4, %v199_v49, 920167782  ;;  %v216_v58 = vsel %vm206_vm4, %v202_v50, 1326507024  ;;  %v288_v6 = vshrl.u32 %v287_v51, 5 }
  0xb1   : > { %v213_v60 = vsel %vm205_vm2, %v196_v48, %v212_v57  ;;  %v217_v61 = vsel %vm205_vm2, %v199_v49, %v216_v58  ;;  %v210_v63 = vsel %vm204_vm5, %v207_v52, %v209_v56  ;;  %v290_v8 = vsub.s32 32, %v289_v62 }
  0xb2   : > { %v214_v0 = vsel %vm204_vm5, %v211_v54, %v213_v60  ;;  %v218_v1 = vsel %vm204_vm5, %v215_v55, %v217_v61  ;;  %v226_v11 = vmul.u32 %v702_v25, %v210_v63  ;;  %v292_v12 = vshll.u32 %v610_v27, %v289_v62 }
  0xb3   : > { %v715_v2 = vmul.u32.u64.low %v702_v25, %v218_v1  ;;  %v716_v3 = vmul.u32.u64.high %v702_v25, %v218_v1, %v715_v2  ;;  %v719_v4 = vmul.u32.u64.low %v702_v25, %v214_v0  ;;  %v720_v5 = vmul.u32.u64.high %v702_v25, %v214_v0, %v719_v4 }
  0xb4   : > { %v295_v14 = vshll.u32 %v611_v31, %v289_v62  ;;  %v298_v15 = vshll.u32 %v612_v33, %v289_v62  ;;  %v293_v16 = vshrl.u32 %v611_v31, %v290_v8  ;;  %v296_v17 = vshrl.u32 %v612_v33, %v290_v8 }
  0xb5   : > { %v299_v18 = vshrl.u32 %v613_v35, %v290_v8  ;;  %v301_v19 = vshll.u32 %v613_v35, %v289_v62  ;;  %vm228_vm6 = vc.u32 %v716_v3, %v719_v4  ;;  %v229_v21 = vadd.s32 1, %v720_v5 }
  0xb6   : > { %v302_v22 = vshrl.u32 %v614_v37, %v290_v8  ;;  %v304_v23 = vshll.u32 %v614_v37, %v289_v62  ;;  %v294_v24 = vor.u32 %v293_v16, %v292_v12  ;;  %v297_v26 = vor.u32 %v296_v17, %v295_v14 }
  0xb7   : > { %v300_v28 = vor.u32 %v299_v18, %v298_v15  ;;  %v305_v29 = vshrl.u32 %v615_v44, %v290_v8  ;;  %v230_v25 = vsel %vm228_vm6, %v229_v21, %v720_v5  ;;  %vm307_vm7 = vcmp.lt.s32.totalorder %v288_v6, 1 }
  0xb8   : > { %v303_v30 = vor.u32 %v302_v22, %v301_v19  ;;  %vm310_vm8 = vcmp.lt.s32.totalorder %v288_v6, 4  ;;  %v231_v31 = vadd.s32 %v230_v25, %v226_v11  ;;  %vm309_vm9 = vcmp.lt.s32.totalorder %v288_v6, 3 }
  0xb9   : > { %v306_v32 = vor.u32 %v305_v29, %v304_v23  ;;  %v312_v33 = vsel %vm310_vm8, %v300_v28, 2102212464  ;;  %v291_v34 = vshrl.u32 %v610_v27, %v290_v8  ;;  %v315_v35 = vsel %vm307_vm7, %v294_v24, %v297_v26 }
  0xba   : > { %v316_v36 = vsel %vm310_vm8, %v303_v30, 920167782  ;;  %v319_v38 = vsel %vm307_vm7, %v297_v26, %v300_v28  ;;  %v232_v39 = vadd.s32 536870912, %v231_v31  ;;  %vm308_vm10 = vcmp.lt.s32.totalorder %v288_v6, 2 }
  0xbb   : > { %v317_v37 = vsel %vm309_vm9, %v300_v28, %v316_v36  ;;  %v320_v40 = vsel %vm310_vm8, %v306_v32, 1326507024  ;;  %v311_v41 = vsel %vm307_vm7, %v291_v34, %v294_v24  ;;  %v313_v42 = vsel %vm309_vm9, %v297_v26, %v312_v33 }
  0xbc   : > { %v318_v43 = vsel %vm308_vm10, %v315_v35, %v317_v37  ;;  %v321_v44 = vsel %vm309_vm9, %v303_v30, %v320_v40  ;;  %v233_v45 = vshrl.u32 %v232_v39, 30  ;;  %v314_v51 = vsel %vm308_vm10, %v311_v41, %v313_v42 }
  0xbd   : > { %v322_v46 = vsel %vm308_vm10, %v319_v38, %v321_v44  ;;  %v730_v47 = vmul.u32.u64.low %v323_v10, %v318_v43  ;;  %v731_v48 = vmul.u32.u64.high %v323_v10, %v318_v43, %v730_v47  ;;  %v330_v54 = vmul.u32 %v323_v10, %v314_v51 }
  0xbe   : > { %v733_v49 = vmul.u32.u64.low %v323_v10, %v322_v46  ;;  %v734_v50 = vmul.u32.u64.high %v323_v10, %v322_v46, %v733_v49  ;;  %v234_v27 = vshll.u32 %v233_v45, 30  ;;  %v227_v2 = vadd.s32 %v719_v4, %v716_v3 }
  0xbf   : > { %v333_v53 = vadd.s32 1, %v731_v48  ;;  %v257_v24 = vsub.s32 4, %v233_v45  ;;  %vm750_vm1 = vcmp.le.f32.partialorder %v275_v20, 0.7853982  ;;  %vm263_vm5 = vweird.f32 %v692_v7 }
  0xc0   : > { %v235_v52 = vsub.s32 %v231_v31, %v234_v27  ;;  %vm332_vm11 = vc.u32 %v734_v50, %v730_v47  ;;  %v331_v3 = vadd.s32 %v730_v47, %v734_v50  ;;  %vm367_vm9 = vweird.f32 %v696_v13 }
  0xc1   : > { %v334_v56 = vsel %vm332_vm11, %v333_v53, %v731_v48  ;;  %v258_v33 = vsel %vm173_vm14, %v257_v24, %v233_v45 }
  0xc2   : > { %v237_v55 = vsub.s32 0, %v235_v52  ;;  %v335_v57 = vadd.s32 %v334_v56, %v330_v54  ;;  %v260_v38 = vsel %vm172_vm15, 0, %v258_v33 }
  0xc3   : > { %v264_v41 = vadd.s32 3, %v260_v38 }
  0xc4   : > { %v467_v58 = vmin.u32 %v237_v55, %v235_v52  ;;  %v336_v59 = vadd.s32 536870912, %v335_v57 }
  0xc5   : > { %v265_v46 = vand.u32 3, %v264_v41 }
  0xc6   : > { %v239_v60 = vclz %v467_v58  ;;  %v337_v61 = vshrl.u32 %v336_v59, 30 }
  0xc7   : > { %vm270_vm2 = vcmp.eq.s32.totalorder %v265_v46, 2  ;;  %vm267_vm3 = vcmp.eq.s32.totalorder %v265_v46, 0  ;;  %vm266_vm4 = vcmp.lt.s32.totalorder %v265_v46, 2 }
  0xc8   : > { %v468_v62 = vadd.s32 4294967294, %v239_v60  ;;  %v338_v63 = vshll.u32 %v337_v61, 30  ;;  %v361_v43 = vsub.s32 4, %v337_v61 }
  0xca   : > { %vm469_vm12 = vcmp.lt.s32.totalorder %v468_v62, 0  ;;  %v339_v1 = vsub.s32 %v335_v57, %v338_v63  ;;  %v362_v47 = vsel %vm277_vm0, %v361_v43, %v337_v61 }
  0xcb   : > { %v242_v0 = vsel %vm469_vm12, 0, %v468_v62  ;;  %v364_v51 = vsel %vm750_vm1, 0, %v362_v47 }
  0xcc   : > { %v243_v5 = vsub.s32 32, %v242_v0  ;;  %v247_v6 = vsub.s32 4294967266, %v242_v0  ;;  %v341_v8 = vsub.s32 0, %v339_v1  ;;  %v244_v10 = vshll.u32 %v235_v52, %v242_v0 }
  0xcd   : > { %v368_v54 = vadd.s32 3, %v364_v51 }
  0xce   : > { %v245_v11 = vshrl.u32 %v227_v2, %v243_v5  ;;  %v248_v12 = vadd.s32 127, %v247_v6  ;;  %v471_v14 = vmin.u32 %v341_v8, %v339_v1 }
  0xcf   : > { %v369_v57 = vand.u32 3, %v368_v54 }
  0xd0   : > { %v246_v15 = vor.u32 %v245_v11, %v244_v10  ;;  %v249_v16 = vshll.u32 %v248_v12, 23  ;;  %v343_v17 = vclz %v471_v14 }
  0xd1   : > { %vm374_vm6 = vcmp.eq.s32.totalorder %v369_v57, 2  ;;  %vm371_vm7 = vcmp.eq.s32.totalorder %v369_v57, 0  ;;  %vm370_vm8 = vcmp.lt.s32.totalorder %v369_v57, 2 }
  0xd2   : > { %v250_v18 = vor.u32 4788187, %v249_v16  ;;  %v472_v19 = vadd.s32 4294967294, %v343_v17  ;;  %v253_v22 = vcvt.s32.f32 %v246_v15 }
  0xd4   : > { %v251_v21 = vand.u32 2147483647, %v250_v18  ;;  %vm473_vm13 = vcmp.lt.s32.totalorder %v472_v19, 0 }
  0xd5   : > { %v346_v26 = vsel %vm473_vm13, 0, %v472_v19 }
  0xd6   : > { %v254_v23 = vmul.f32 %v253_v22, %v251_v21  ;;  %v347_v4 = vsub.s32 32, %v346_v26  ;;  %v351_v28 = vsub.s32 4294967266, %v346_v26  ;;  %v348_v25 = vshll.u32 %v339_v1, %v346_v26 }
  0xd8   : > { %v255_v29 = vxor.u32 2147483648, %v254_v23  ;;  %v349_v30 = vshrl.u32 %v331_v3, %v347_v4  ;;  %v352_v31 = vadd.s32 127, %v351_v28 }
  0xda   : > { %v256_v32 = vsel %vm173_vm14, %v255_v29, %v254_v23  ;;  %v350_v35 = vor.u32 %v349_v30, %v348_v25  ;;  %v353_v36 = vshll.u32 %v352_v31, 23 }
  0xdb   : > { %v259_v34 = vsel %vm172_vm15, %v692_v7, %v256_v32 }
  0xdc   : > { %537 = vcosq.f32 %v259_v34  ;;  %v354_v39 = vor.u32 4788187, %v353_v36  ;;  %v357_v40 = vcvt.s32.f32 %v350_v35 }
  0xdd   : > { %539 = vsinq.f32 %v259_v34 }
  0xde   : > { %v355_v37 = vand.u32 2147483647, %v354_v39 }
  0xe0   : > { %v358_v42 = vmul.f32 %v357_v40, %v355_v37 }
  0xe2   : > { %v359_v44 = vxor.u32 2147483648, %v358_v42 }
  0xe4   : > { %v360_v45 = vsel %vm277_vm0, %v359_v44, %v358_v42 }
  0xe5   : > { %v363_v49 = vsel %vm750_vm1, %v696_v13, %v360_v45 }
  0xe6   : > { %v538_v48 = vpop.eup %537  ;;  %541 = vcosq.f32 %v363_v49 }
  0xe7   : > { %v540_v50 = vpop.eup %539  ;;  %v271_v27 = vxor.u32 2147483648, %v538_v48  ;;  %543 = vsinq.f32 %v363_v49 }
  0xe8   : > { %v268_v20 = vxor.u32 2147483648, %v540_v50 }
  0xe9   : > { %v272_v52 = vsel %vm270_vm2, %v271_v27, %v540_v50 }
  0xea   : > { %v269_v53 = vsel %vm267_vm3, %v538_v48, %v268_v20 }
  0xeb   : > { %v273_v55 = vsel %vm266_vm4, %v269_v53, %v272_v52 }
  0xec   : > { %v274_v56 = vsel %vm263_vm5, nan, %v273_v55 }
  0xed   : > { %379 = vst [vmem:[%s137_s4] sm:$0xff] %v274_v56 }
  0xf0   : > { %v542_v58 = vpop.eup %541 }
  0xf1   : > { %v544_v59 = vpop.eup %543  ;;  %v375_v60 = vxor.u32 2147483648, %v542_v58 }
  0xf2   : > { %v372_v61 = vxor.u32 2147483648, %v544_v59 }
  0xf3   : > { %v376_v62 = vsel %vm374_vm6, %v375_v60, %v544_v59 }
  0xf4   : > { %v373_v63 = vsel %vm371_vm7, %v542_v58, %v372_v61 }
  0xf5   : > { %v377_v7 = vsel %vm370_vm8, %v373_v63, %v376_v62 }
  0xf6   : > { %v378_v0 = vsel %vm367_vm9, nan, %v377_v7 }
  0xf7   : > { %380 = vst [vmem:[%s137_s4 + $0x8] sm:$0xff] %v378_v0 }
  0xf8   : > { %558 = shalt.err (!%p555_p3)
}
  0xf9   : > { %s559_s23 = scalar_lea.hbm %s766_s14, 256  ;;  %s563_s26 = scalar_lea.hbm %s816_s2, 512 }
  0xfa   : > { %p560_p4 = scmp.ne.s32.totalorder %s766_s14, %s559_s23  ;;  %p564_p9 = scmp.lt.u32.totalorder %s766_s14, %s816_s2 }
  0xfb   : > { %p565_p10 = scmp.lt.u32.totalorder %s563_s26, %s559_s23  ;;  %p567_p12 = scmp.lt.u32.totalorder %s559_s23, %s766_s14 }
  0xfc   : > { %p561_p7 = pnand %p560_p4, %p672_p5 }
  0xfd   : > { %p566_p11 = por %p565_p10, %p564_p9 }
  0xfe   : > { %p562_p8 = pneg %p561_p7 }
  0xff   : > { %p568_p13 = por %p567_p12, %p566_p11 }
 0x101   : > { %p569_p0 = pnand %p568_p13, %p562_p8 }
 0x103   : > { %572 = shalt.err (!%p569_p0)
}
 0x104   : > { %s617_s29 = smov 128   ;;  %s618_s30 = smov 8  }
 0x105   : > { %488 = dma.vmem_to_hbm [thread:$0]  (%p672_p5), %s768_s6, 256, %s766_s14, %s773_s13, %s617_s29, %s617_s29, %s618_s30  }
 0x106 PF: > { %p494_p1 = scmp.ge.s32.totalorder %s607_s12, 2  ;;  %s410_s3 = sand.u32 1, %s595_s9  }
 0x107   : > { %s411_s4 = scalar_lea.sflag [#allocation3], %s410_s3 }
 0x108   : > { %p491_p2 = pnand %p494_p1, %p676_p6 }
 0x10a   : > { %590 = dma.done.wait (!%p491_p2), %s411_s4, 256  }
 0x10b   : > { %592 = vsyncadd (!%p491_p2), %s411_s4, 4294967040  ;;  %p12_p3 = scmp.ge.s32.totalorder %s659_s15, 4   ;;  %s821_s9 = smov %s599_s10 }
 0x10c   : > { %s822_s10 = smov %s603_s11  ;;  %s823_s11 = smov %s670_s18 }
 0x10d   : > { %s824_s12 = smov %s659_s15  ;;  %14 = sbr.rel (!%p12_p3) target bundleno = 3 (0x3), region = 63 }
 0x114   :  { %416 = vsyncpa [#allocation3], 1 }
 0x115   :  { %418 = vsyncpa [#allocation3 + $0x1], 1 }

</bundles_post_ra>
